<compile_context>
chip_gen: v7x
topology: tpu7x:2x2x1
jax: 0.10.0
libtpu: 0.0.40
codegen_flags: <defaults>
</compile_context>

<pallas_src>
import math

import jax
import jax.numpy as jnp
from jax.experimental import pallas as pl
from jax.experimental.pallas import tpu as pltpu


_LANE = 128
_SUBLANE = 8
# Fused-path eligibility budget: stay well under v7x's 64 MiB/TensorCore
# physical VMEM (v5e/v6e have 128 MiB), leaving room for compiler scratch.
_FUSED_VMEM_BUDGET = 44 * 1024 * 1024
_VMEM_CEIL = 60 * 1024 * 1024


def _round_up(x, m):
    return (x + m - 1) // m * m


def _largest_divisor(n, cap, mult):
    """Largest d <= cap with d % mult == 0 and n % d == 0 (n is a multiple of mult)."""
    cap = min(cap, n)
    for d in range(cap - cap % mult, 0, -mult):
        if n % d == 0:
            return d
    return mult


# ---------------------------------------------------------------------------
# Fused kernel: support panel computed on the i == 0 sweep, kept in VMEM.
#   out[b, i-tile, :] = sum_k adj[b, i-tile, k-tile] @ (x[b, k-tile, :] @ W) + bias
# ---------------------------------------------------------------------------
def _fused_gcn_kernel(x_ref, w_ref, adj_ref, bias_ref, o_ref, sup_ref, acc_ref):
    # x_ref:   (1, TK, F_in)     bf16     w_ref:  (F_in, F_out_p) bf16
    # adj_ref: (1, TM, TK)       bf16     bias:   (1, F_out_p)    f32
    # o_ref:   (1, TM, F_out_p)  out dtype
    # sup_ref: (N_p, F_out_p)    bf16 scratch (per-batch support panel)
    # acc_ref: (TM, F_out_p)     f32 scratch
    i = pl.program_id(1)
    k = pl.program_id(2)
    tk = adj_ref.shape[2]
    start = pl.multiple_of(k * tk, _LANE)

    # Compute this k-tile of support = x @ W exactly once per batch element.
    # Grid order is b -> i -> k, so the i == 0 sweep fills the whole panel
    # before any row tile i > 0 reuses it.
    @pl.when(i == 0)
    def _():
        s = jnp.dot(x_ref[0], w_ref[...], preferred_element_type=jnp.float32)
        sup_ref[pl.ds(start, tk), :] = s.astype(sup_ref.dtype)

    @pl.when(k == 0)
    def _():
        acc_ref[...] = jnp.zeros_like(acc_ref)

    acc_ref[...] += jnp.dot(adj_ref[0], sup_ref[pl.ds(start, tk), :],
                            preferred_element_type=jnp.float32)

    @pl.when(k == pl.num_programs(2) - 1)
    def _():
        o_ref[0] = (acc_ref[...] + bias_ref[...]).astype(o_ref.dtype)


# ---------------------------------------------------------------------------
# Streaming fallback (support through HBM) for panels too large for VMEM.
# ---------------------------------------------------------------------------
def _support_kernel(x_ref, w_ref, s_ref):
    # x_ref: (1, TM, F_in)  w_ref: (F_in, F_out_p)  s_ref: (1, TM, F_out_p) bf16
    # TODO(synk): tile the F_in contraction here if F_in ever exceeds ~8k.
    s_ref[0] = jnp.dot(x_ref[0], w_ref[...],
                       preferred_element_type=jnp.float32).astype(s_ref.dtype)


def _adj_matmul_kernel(adj_ref, s_ref, bias_ref, o_ref, acc_ref):
    # adj_ref: (1, TM, TK)  s_ref: (1, TK, F_out_p)  bias_ref: (1, F_out_p) f32
    # o_ref:   (1, TM, F_out_p)  acc_ref: (TM, F_out_p) f32 scratch
    k = pl.program_id(2)

    @pl.when(k == 0)
    def _():
        acc_ref[...] = jnp.zeros_like(acc_ref)

    acc_ref[...] += jnp.dot(adj_ref[0], s_ref[0],
                            preferred_element_type=jnp.float32)

    @pl.when(k == pl.num_programs(2) - 1)
    def _():
        o_ref[0] = (acc_ref[...] + bias_ref[...]).astype(o_ref.dtype)


def graph_convolution(x, adj, weight, bias=None, *,
                      stream_dtype=jnp.bfloat16,
                      max_tm=None, max_tk=None,
                      force_streaming=False):
    """GCN layer forward: adj @ (x @ weight) [+ bias].

    x:      (B, N, F_in)
    adj:    (B, N, N)
    weight: (F_in, F_out)
    bias:   (1, 1, F_out), (F_out,) or None
    returns (B, N, F_out) in x.dtype
    """
    B, N, F_in = x.shape
    F_out = weight.shape[1]
    out_dtype = x.dtype
    sbytes = jnp.dtype(stream_dtype).itemsize
    obytes = jnp.dtype(out_dtype).itemsize

    # ---- padding / tile selection (128-granular, exact divisors of N_p) -----
    F_out_p = _round_up(F_out, _LANE)
    N_p = _round_up(N, _LANE)

    tm_cap = max_tm or (1024 if F_out_p <= 256 else 512)
    tk_cap = max_tk or 1024
    TK = _largest_divisor(N_p, tk_cap, _LANE)      # lane dim: multiple of 128
    TM = _largest_divisor(N_p, tm_cap, _SUBLANE)   # sublane dim: multiple of 8
    # Keep >= 2 (batch x row-tile) work units so both v7x TensorCores can be
    # fed on the streaming path (the fused path parallelises over batch only).
    if B * (N_p // TM) < 2 and N_p // 2 >= _SUBLANE:
        TM = _largest_divisor(N_p, N_p // 2, _SUBLANE)
    n_i = N_p // TM
    n_k = N_p // TK

    # ---- cast to the streaming dtype and (only if needed) zero-pad ----------
    # Cast + pad are emitted together so XLA produces a single pass over adj/x.
    # TODO(synk): mask the ragged last tile in-kernel to drop the pad copy when
    # N is not 128-aligned.
    dN = N_p - N
    x_s = x.astype(stream_dtype)
    adj_s = adj.astype(stream_dtype)
    if dN:
        x_s = jnp.pad(x_s, ((0, 0), (0, dN), (0, 0)))
        adj_s = jnp.pad(adj_s, ((0, 0), (0, dN), (0, dN)))
    w_s = weight.astype(stream_dtype)
    if F_out_p != F_out:
        w_s = jnp.pad(w_s, ((0, 0), (0, F_out_p - F_out)))

    if bias is None:
        bias_p = jnp.zeros((1, F_out_p), jnp.float32)
    else:
        bias_p = jnp.reshape(bias, (1, F_out)).astype(jnp.float32)
        if F_out_p != F_out:
            bias_p = jnp.pad(bias_p, ((0, 0), (0, F_out_p - F_out)))

    # ---- VMEM accounting (double-buffered blocks + scratch) -----------------
    fused_vmem = (2 * TM * TK * sbytes              # adj blocks
                  + 2 * TK * F_in * sbytes          # x blocks
                  + 2 * F_in * F_out_p * sbytes     # weight
                  + 2 * F_out_p * 4                 # bias
                  + 2 * TM * F_out_p * obytes       # output blocks
                  + N_p * F_out_p * sbytes          # support panel scratch
                  + TM * F_out_p * 4)               # f32 accumulator
    use_fused = (not force_streaming) and fused_vmem <= _FUSED_VMEM_BUDGET

    if use_fused:
        out_p = pl.pallas_call(
            _fused_gcn_kernel,
            out_shape=jax.ShapeDtypeStruct((B, N_p, F_out_p), out_dtype),
            grid_spec=pltpu.PrefetchScalarGridSpec(
                num_scalar_prefetch=0,
                grid=(B, n_i, n_k),
                in_specs=[
                    pl.BlockSpec((1, TK, F_in), lambda b, i, k: (b, k, 0)),
                    pl.BlockSpec((F_in, F_out_p), lambda b, i, k: (0, 0)),
                    pl.BlockSpec((1, TM, TK), lambda b, i, k: (b, i, k)),
                    pl.BlockSpec((1, F_out_p), lambda b, i, k: (0, 0)),
                ],
                out_specs=pl.BlockSpec((1, TM, F_out_p),
                                       lambda b, i, k: (b, i, 0)),
                scratch_shapes=[
                    pltpu.VMEM((N_p, F_out_p), stream_dtype),
                    pltpu.VMEM((TM, F_out_p), jnp.float32),
                ],
            ),
            compiler_params=pltpu.CompilerParams(
                # Row tiles i > 0 read the support panel produced at i == 0,
                # so only the batch axis may be split across TensorCores.
                dimension_semantics=("parallel", "arbitrary", "arbitrary"),
                vmem_limit_bytes=min(int(fused_vmem) + (8 << 20), _VMEM_CEIL),
            ),
            cost_estimate=pl.CostEstimate(
                flops=2 * B * (N_p * F_in * F_out_p + N_p * N_p * F_out_p),
                transcendentals=0,
                bytes_accessed=(B * N_p * N_p * sbytes
                                + n_i * B * N_p * F_in * sbytes
                                + B * N_p * F_out_p * obytes),
            ),
        )(x_s, w_s, adj_s, bias_p)
    else:
        # ---- Kernel 1: support = x @ W, stored lane-dense in bf16 -----------
        k1_vmem = (2 * TM * F_in * sbytes + 2 * F_in * F_out_p * sbytes
                   + 2 * TM * F_out_p * sbytes)
        support = pl.pallas_call(
            _support_kernel,
            out_shape=jax.ShapeDtypeStruct((B, N_p, F_out_p), stream_dtype),
            grid_spec=pltpu.PrefetchScalarGridSpec(
                num_scalar_prefetch=0,
                grid=(B, n_i),
                in_specs=[
                    pl.BlockSpec((1, TM, F_in), lambda b, i: (b, i, 0)),
                    pl.BlockSpec((F_in, F_out_p), lambda b, i: (0, 0)),
                ],
                out_specs=pl.BlockSpec((1, TM, F_out_p), lambda b, i: (b, i, 0)),
            ),
            compiler_params=pltpu.CompilerParams(
                dimension_semantics=("parallel", "parallel"),
                vmem_limit_bytes=min(int(k1_vmem) + (8 << 20), _VMEM_CEIL),
            ),
        )(x_s, w_s)

        # ---- Kernel 2: out = adj @ support + bias (per-k support tiles) -----
        k2_vmem = (2 * TM * TK * sbytes + 2 * TK * F_out_p * sbytes
                   + 2 * F_out_p * 4 + 2 * TM * F_out_p * obytes
                   + TM * F_out_p * 4)
        out_p = pl.pallas_call(
            _adj_matmul_kernel,
            out_shape=jax.ShapeDtypeStruct((B, N_p, F_out_p), out_dtype),
            grid_spec=pltpu.PrefetchScalarGridSpec(
                num_scalar_prefetch=0,
                grid=(B, n_i, n_k),
                in_specs=[
                    pl.BlockSpec((1, TM, TK), lambda b, i, k: (b, i, k)),
                    pl.BlockSpec((1, TK, F_out_p), lambda b, i, k: (b, k, 0)),
                    pl.BlockSpec((1, F_out_p), lambda b, i, k: (0, 0)),
                ],
                out_specs=pl.BlockSpec((1, TM, F_out_p),
                                       lambda b, i, k: (b, i, 0)),
                scratch_shapes=[pltpu.VMEM((TM, F_out_p), jnp.float32)],
            ),
            compiler_params=pltpu.CompilerParams(
                dimension_semantics=("parallel", "parallel", "arbitrary"),
                vmem_limit_bytes=min(int(k2_vmem) + (8 << 20), _VMEM_CEIL),
            ),
            cost_estimate=pl.CostEstimate(
                flops=2 * B * N_p * N_p * F_out_p,
                transcendentals=0,
                bytes_accessed=(B * N_p * N_p * sbytes
                                + n_i * B * N_p * F_out_p * sbytes
                                + B * N_p * F_out_p * obytes),
            ),
        )(adj_s, support, bias_p)

    return out_p[:, :N, :F_out]


def init_gcn_params(key, in_features, out_features, bias=False, dtype=jnp.float32):
    """Mirrors reset_parameters(): U(-stdv, stdv), stdv = 1/sqrt(out_features)."""
    stdv = 1.0 / math.sqrt(out_features)
    k_w, k_b = jax.random.split(key)
    weight = jax.random.uniform(
        k_w, (in_features, out_features), dtype=dtype, minval=-stdv, maxval=stdv)
    b = None
    if bias:
        b = jax.random.uniform(
            k_b, (1, 1, out_features), dtype=dtype, minval=-stdv, maxval=stdv)
    return weight, b


if __name__ == "__main__":
    gcn = jax.jit(graph_convolution,
                  static_argnames=("stream_dtype", "max_tm", "max_tk",
                                   "force_streaming"))

    def matched_ref(x, adj, weight, bias, stream_dtype=jnp.bfloat16):
        # Same precision path as the kernels: bf16 operands, f32 accumulation,
        # support rounded to bf16 between the two matmuls.
        xs = x.astype(stream_dtype).astype(jnp.float32)
        ws = weight.astype(stream_dtype).astype(jnp.float32)
        adjs = adj.astype(stream_dtype).astype(jnp.float32)
        support = jnp.matmul(xs, ws).astype(stream_dtype).astype(jnp.float32)
        out = jnp.matmul(adjs, support)
        if bias is not None:
            out = out + bias.astype(jnp.float32)
        return out.astype(x.dtype)

    def run_case(case_key, B, N, F_in, F_out, with_bias, **kwargs):
        k_x, k_adj, k_p = jax.random.split(case_key, 3)
        x = jax.random.normal(k_x, (B, N, F_in), dtype=jnp.float32)
        adj = jax.random.uniform(k_adj, (B, N, N), dtype=jnp.float32)
        weight, bias = init_gcn_params(k_p, F_in, F_out, bias=with_bias)

        out = jax.block_until_ready(gcn(x, adj, weight, bias, **kwargs))
        assert out.shape == (B, N, F_out), out.shape

        # Tight check against a reference following the kernel's precision path.
        ref = matched_ref(x, adj, weight, bias)
        assert jnp.allclose(out, ref, rtol=5e-3, atol=5e-2), (
            "matched-precision max abs err", float(jnp.max(jnp.abs(out - ref))))

        # Loose check against the pure-f32 PyTorch semantics (bf16 streaming
        # makes this slightly looser -- documented trade-off).
        ref32 = jnp.matmul(adj, jnp.matmul(x, weight))
        if bias is not None:
            ref32 = ref32 + bias
        assert jnp.allclose(out, ref32, rtol=5e-2, atol=5e-1), (
            "f32-reference max abs err", float(jnp.max(jnp.abs(out - ref32))))

    key = jax.random.PRNGKey(0)
    k1, k2, k3, k4 = jax.random.split(key, 4)

    # Small shape consistent with the module defaults (bias=False): single tile.
    run_case(k1, B=2, N=16, F_in=32, F_out=64, with_bias=False)
    # N=600 pads to 640 (not 1024); a single (640, 640) adj tile per batch.
    run_case(k2, B=2, N=600, F_in=48, F_out=96, with_bias=True)
    # Same shape but forced 128x128 tiles: exercises the k accumulation and the
    # i > 0 reuse of the VMEM-resident support panel in the fused kernel.
    run_case(k3, B=2, N=600, F_in=48, F_out=96, with_bias=True,
             max_tm=128, max_tk=128)
    # Streaming (support-through-HBM) fallback path, forced at a small shape.
    run_case(k4, B=2, N=600, F_in=48, F_out=96, with_bias=True,
             max_tm=128, max_tk=128, force_streaming=True)

    print("KERNEL_OK")
</pallas_src>

<mosaic_0001>
module attributes {stable_mosaic.version = 11 : i64} {
  func.func @_fused_gcn_kernel(%arg0: i32, %arg1: i32, %arg2: i32, %arg3: memref<1x128x32xbf16, #tpu.memory_space<vmem>>, %arg4: memref<32x128xbf16, #tpu.memory_space<vmem>>, %arg5: memref<1x128x128xbf16, #tpu.memory_space<vmem>>, %arg6: memref<1x128xf32, #tpu.memory_space<vmem>>, %arg7: memref<1x128x128xf32, #tpu.memory_space<vmem>>, %arg8: memref<128x128xbf16, #tpu.memory_space<vmem>>, %arg9: memref<128x128xf32, #tpu.memory_space<vmem>>) attributes {dimension_semantics = [#tpu.dimension_semantics<parallel>, #tpu.dimension_semantics<arbitrary>, #tpu.dimension_semantics<arbitrary>], iteration_bounds = array<i64: 2, 1, 1>, scalar_prefetch = 0 : i64, scratch_operands = 2 : i64, tpu.core_type = #tpu.core_type<tc>, window_params = [{transform_indices = @transform_0, window_bounds = array<i64: 1, 128, 32>}, {pipeline_mode = #tpu.pipeline_mode<synchronous>, transform_indices = @transform_1, window_bounds = array<i64: 32, 128>}, {transform_indices = @transform_2, window_bounds = array<i64: 1, 128, 128>}, {pipeline_mode = #tpu.pipeline_mode<synchronous>, transform_indices = @transform_3, window_bounds = array<i64: 1, 128>}, {transform_indices = @transform_4, window_bounds = array<i64: 1, 128, 128>}]} {
    %c128_i32 = arith.constant 128 : i32
    %0 = arith.muli %arg2, %c128_i32 : i32
    %1 = tpu.assume_multiple %0, 128 : i32
    %c0_i32 = arith.constant 0 : i32
    %2 = arith.cmpi eq, %arg1, %c0_i32 : i32
    %3 = arith.extui %2 : i1 to i32
    %c0_i32_0 = arith.constant 0 : i32
    %4 = arith.cmpi ne, %3, %c0_i32_0 : i32
    scf.if %4 {
      %c0_12 = arith.constant 0 : index
      %c0_13 = arith.constant 0 : index
      %c0_14 = arith.constant 0 : index
      %19 = vector.load %arg3[%c0_12, %c0_13, %c0_14] : memref<1x128x32xbf16, #tpu.memory_space<vmem>>, vector<1x128x32xbf16>
      %20 = vector.shape_cast %19 : vector<1x128x32xbf16> to vector<128x32xbf16>
      %c0_15 = arith.constant 0 : index
      %c0_16 = arith.constant 0 : index
      %21 = vector.load %arg4[%c0_15, %c0_16] : memref<32x128xbf16, #tpu.memory_space<vmem>>, vector<32x128xbf16>
      %cst_17 = arith.constant dense<0.000000e+00> : vector<128x128xf32>
      %22 = tpu.matmul %20, %21, %cst_17 {dimension_numbers = #tpu.dot_dimension_numbers<[1], [0], [0], [1], [0, 0, 1, 1], [], []>} : vector<128x32xbf16>, vector<32x128xbf16>, vector<128x128xf32> -> vector<128x128xf32>
      %23 = arith.truncf %22 : vector<128x128xf32> to vector<128x128xbf16>
      %24 = arith.index_cast %1 : i32 to index
      %c0_18 = arith.constant 0 : index
      %25 = vector.load %arg8[%24, %c0_18] : memref<128x128xbf16, #tpu.memory_space<vmem>>, vector<128x128xbf16>
      tpu.vector_store %arg8[%24, %c0_18], %23 {strides = array<i32>} : memref<128x128xbf16, #tpu.memory_space<vmem>>, vector<128x128xbf16>,
    } else {
    }
    %c0_i32_1 = arith.constant 0 : i32
    %5 = arith.cmpi eq, %arg2, %c0_i32_1 : i32
    %6 = arith.extui %5 : i1 to i32
    %c0_i32_2 = arith.constant 0 : i32
    %7 = arith.cmpi ne, %6, %c0_i32_2 : i32
    scf.if %7 {
      %cst_12 = arith.constant 0.000000e+00 : f32
      %19 = vector.broadcast %cst_12 : f32 to vector<128x128xf32>
      %c0_13 = arith.constant 0 : index
      %c0_14 = arith.constant 0 : index
      %20 = vector.load %arg9[%c0_13, %c0_14] : memref<128x128xf32, #tpu.memory_space<vmem>>, vector<128x128xf32>
      tpu.vector_store %arg9[%c0_13, %c0_14], %19 {strides = array<i32>} : memref<128x128xf32, #tpu.memory_space<vmem>>, vector<128x128xf32>,
    } else {
    }
    %c0 = arith.constant 0 : index
    %c0_3 = arith.constant 0 : index
    %8 = vector.load %arg9[%c0, %c0_3] : memref<128x128xf32, #tpu.memory_space<vmem>>, vector<128x128xf32>
    %c0_4 = arith.constant 0 : index
    %c0_5 = arith.constant 0 : index
    %c0_6 = arith.constant 0 : index
    %9 = vector.load %arg5[%c0_4, %c0_5, %c0_6] : memref<1x128x128xbf16, #tpu.memory_space<vmem>>, vector<1x128x128xbf16>
    %10 = vector.shape_cast %9 : vector<1x128x128xbf16> to vector<128x128xbf16>
    %11 = arith.index_cast %1 : i32 to index
    %c0_7 = arith.constant 0 : index
    %12 = vector.load %arg8[%11, %c0_7] : memref<128x128xbf16, #tpu.memory_space<vmem>>, vector<128x128xbf16>
    %cst = arith.constant dense<0.000000e+00> : vector<128x128xf32>
    %13 = tpu.matmul %10, %12, %cst {dimension_numbers = #tpu.dot_dimension_numbers<[1], [0], [0], [1], [0, 0, 1, 1], [], []>} : vector<128x128xbf16>, vector<128x128xbf16>, vector<128x128xf32> -> vector<128x128xf32>
    %14 = arith.addf %8, %13 : vector<128x128xf32>
    %c0_8 = arith.constant 0 : index
    %c0_9 = arith.constant 0 : index
    %15 = vector.load %arg9[%c0_8, %c0_9] : memref<128x128xf32, #tpu.memory_space<vmem>>, vector<128x128xf32>
    tpu.vector_store %arg9[%c0_8, %c0_9], %14 {strides = array<i32>} : memref<128x128xf32, #tpu.memory_space<vmem>>, vector<128x128xf32>,
    %c0_i32_10 = arith.constant 0 : i32
    %16 = arith.cmpi eq, %arg2, %c0_i32_10 : i32
    %17 = arith.extui %16 : i1 to i32
    %c0_i32_11 = arith.constant 0 : i32
    %18 = arith.cmpi ne, %17, %c0_i32_11 : i32
    scf.if %18 {
      %c0_12 = arith.constant 0 : index
      %c0_13 = arith.constant 0 : index
      %19 = vector.load %arg9[%c0_12, %c0_13] : memref<128x128xf32, #tpu.memory_space<vmem>>, vector<128x128xf32>
      %c0_14 = arith.constant 0 : index
      %c0_15 = arith.constant 0 : index
      %20 = vector.load %arg6[%c0_14, %c0_15] : memref<1x128xf32, #tpu.memory_space<vmem>>, vector<1x128xf32>
      %21 = vector.broadcast %20 : vector<1x128xf32> to vector<128x128xf32>
      %22 = arith.addf %19, %21 : vector<128x128xf32>
      %c0_16 = arith.constant 0 : index
      %c0_17 = arith.constant 0 : index
      %c0_18 = arith.constant 0 : index
      %23 = vector.load %arg7[%c0_16, %c0_17, %c0_18] : memref<1x128x128xf32, #tpu.memory_space<vmem>>, vector<1x128x128xf32>
      %24 = vector.shape_cast %23 : vector<1x128x128xf32> to vector<128x128xf32>
      %25 = vector.shape_cast %22 : vector<128x128xf32> to vector<1x128x128xf32>
      tpu.vector_store %arg7[%c0_16, %c0_17, %c0_18], %25 {strides = array<i32>} : memref<1x128x128xf32, #tpu.memory_space<vmem>>, vector<1x128x128xf32>,
    } else {
    }
    return
  }
  func.func @transform_0(%arg0: i32, %arg1: i32, %arg2: i32) -> (i32, i32, i32) {
    %c0_i32 = arith.constant 0 : i32
    %c0_i32_0 = arith.constant 0 : i32
    return %arg0, %arg2, %c0_i32 : i32, i32, i32
  }
  func.func @transform_1(%arg0: i32, %arg1: i32, %arg2: i32) -> (i32, i32) {
    %c0_i32 = arith.constant 0 : i32
    %c0_i32_0 = arith.constant 0 : i32
    %c0_i32_1 = arith.constant 0 : i32
    return %c0_i32, %c0_i32_0 : i32, i32
  }
  func.func @transform_2(%arg0: i32, %arg1: i32, %arg2: i32) -> (i32, i32, i32) {
    %c0_i32 = arith.constant 0 : i32
    return %arg0, %arg1, %arg2 : i32, i32, i32
  }
  func.func @transform_3(%arg0: i32, %arg1: i32, %arg2: i32) -> (i32, i32) {
    %c0_i32 = arith.constant 0 : i32
    %c0_i32_0 = arith.constant 0 : i32
    %c0_i32_1 = arith.constant 0 : i32
    return %c0_i32, %c0_i32_0 : i32, i32
  }
  func.func @transform_4(%arg0: i32, %arg1: i32, %arg2: i32) -> (i32, i32, i32) {
    %c0_i32 = arith.constant 0 : i32
    %c0_i32_0 = arith.constant 0 : i32
    return %arg0, %arg1, %c0_i32 : i32, i32, i32
  }
}

</mosaic_0001>

<bundles_post_ra>
// kernel: graph_convolution.1
= control target key start
LH: loop header
LB: loop body
LE: loop exit
PB: predicated region body
PF: predicated region fallthrough
CT: control target
= control target key end

     0   :  { %s1153_s15 = smov 0   ;;  %s1155_s16 = smov 0   ;;  %s1238_s0 = inlined_call_operand.vmem [shape: bf16[2,128,32], index: 0, kind: input, shape index: {}]   ;;  %s1239_s1 = inlined_call_operand.vmem [shape: bf16[32,128], index: 1, kind: input, shape index: {}]   ;;  %s1240_s2 = inlined_call_operand.vmem [shape: bf16[2,128,128], index: 2, kind: input, shape index: {}]   ;;  %s1241_s3 = inlined_call_operand.vmem [shape: f32[1,128], index: 3, kind: input, shape index: {}]   ;;  %s1242_s4 = inlined_call_operand.vmem [shape: f32[2,128,128], index: 4, kind: output, shape index: {}]  }
   0x1   :  { %s1157_s17 = smov 0  }
   0x2 LB: > { %s33_s18 = sadd.s32 1, %s1122_s16  ;;  %p929_p0 = scmp.ge.s32.totalorder %s1126_s17, 1  ;;  %s1126_s17 = sphi %s1157_s17, %s14_s17   ;;  %s1122_s16 = sphi %s1155_s16, %s1244_s16   ;;  %s1118_s15 = sphi %s1153_s15, %s1243_s15  }
   0x3   : > { %p35_p1 = scmp.ge.s32.totalorder %s33_s18, 2  ;;  %p212_p2 = scmp.lt.s32.totalorder %s1126_s17, 3 }
   0x5   : > { %s1246_s18 = smov (%p35_p1, %s33_s18), 0  ;;  %p213_p3 = pnand %p929_p0, %p212_p2 }
   0x6   : > { %v1086_v0 = vld [vmem:[%s1239_s1] sm:$0xff] (!%p213_p3)   ;;  %p259_p4 = scmp.lt.s32.totalorder (!%p213_p3), %s1118_s15, 1  ;;  %v1087_v1 = vld [vmem:[%s1239_s1 + $0x8] sm:$0xff] (!%p213_p3)   ;;  %vm369_vm0 = vcmask (!%p213_p3), 261120  }
   0x7   : > { %216 = sbr.rel (%p213_p3) target bundleno = 502 (0x1f6), region = 36  ;;  %994 = vmatprep.subr.bf16.mxu0 (!%p213_p3), %v1086_v0  ;;  %v962_v42 = vld [vmem:[%s1241_s3] ss:$0 sm:$0xff] (!%p213_p3) }
   0x8   : > { %995 = vmatpush3.bf16.msra.mxu0 (!%p213_p3), %v1086_v0 }
   0x9   : > { %996 = vmatprep.subr.bf16.mxu0 (!%p213_p3), %v1087_v1 }
   0xc   : > { %997 = vmatpush3.bf16.msra.mxu0 (!%p213_p3), %v1087_v1 }
   0xe   : > { %s1248_s15 = smov (!%p259_p4, %s1118_s15), 1 }
   0xf   : > { %s965_s23 = sshll.u32 %s1248_s15, 6  ;;  %s967_s30 = sshll.u32 %s1248_s15, 7 }
  0x10   : > { %s266_s26 = scalar_lea.vmem %s1238_s0, %s965_s23  ;;  %s1194_s29 = scalar_lea.vmem %s1240_s2, %s965_s23 }
  0x11   : > { %v1088_v2 = vld [vmem:[%s266_s26] sm:$0xff]   ;;  %v1089_v3 = vld [vmem:[%s266_s26 + $0x8] sm:$0xff]   ;;  %v1090_v4 = vld [vmem:[%s266_s26 + $0x10] sm:$0xff]   ;;  %s1211_s9 = scalar_lea.vmem %s1242_s4, %s967_s30 }
  0x12   : > { %998 = vmatprep.mubr.msk.bf16.mxu0 %vm369_vm0, %v1088_v2  ;;  %v1091_v5 = vld [vmem:[%s266_s26 + $0x18] sm:$0xff]   ;;  %v1092_v6 = vld [vmem:[%s266_s26 + $0x20] sm:$0xff]   ;;  %v1093_v7 = vld [vmem:[%s266_s26 + $0x28] sm:$0xff]  }
  0x13   : > { %999 = vmatmul.mubr.msk.bf16.vlgmr.msra.gmra.mrb[0].mxu0 %vm369_vm0, %v1089_v3  ;;  %v1094_v8 = vld [vmem:[%s266_s26 + $0x30] sm:$0xff]   ;;  %v1095_v9 = vld [vmem:[%s266_s26 + $0x38] sm:$0xff]   ;;  %v1100_v11 = vld [vmem:[%s1194_s29] sm:$0xff]  }
  0x14   : > { %1002 = vmatprep.mubr.msk.bf16.mxu0 %vm369_vm0, %v1090_v4  ;;  %v1096_v10 = vld [vmem:[%s1194_s29 + $0x10] sm:$0xff]   ;;  %v1097_v36 = vld [vmem:[%s1194_s29 + $0x18] sm:$0xff]   ;;  %v1101_v37 = vld [vmem:[%s1194_s29 + $0x8] sm:$0xff]  }
  0x15   : > { %1034 = vmatprep.mubr.bf16.mxu1 %v1096_v10  ;;  %v1098_v38 = vld [vmem:[%s1194_s29 + $0x20] sm:$0xff]   ;;  %v1099_v39 = vld [vmem:[%s1194_s29 + $0x28] sm:$0xff]   ;;  %v1102_v40 = vld [vmem:[%s1194_s29 + $0x30] sm:$0xff]  }
  0x16   : > { %v1103_v41 = vld [vmem:[%s1194_s29 + $0x38] sm:$0xff]  }
  0x1b   : > { %1003 = vmatmul.mubr.msk.bf16.gmra.mrb[4].mxu0 %vm369_vm0, %v1091_v5 }
  0x1c   : > { %1006 = vmatprep.mubr.msk.bf16.mxu0 %vm369_vm0, %v1092_v6 }
  0x23   : > { %1007 = vmatmul.mubr.msk.bf16.gmra.mrb[8].mxu0 %vm369_vm0, %v1093_v7 }
  0x24   : > { %1010 = vmatprep.mubr.msk.bf16.mxu0 %vm369_vm0, %v1094_v8 }
  0x2b   : > { %1011 = vmatmul.mubr.msk.bf16.gmra.mrb[12].mxu0 %vm369_vm0, %v1095_v9 }
  0x2c   : > { %1030 = vmatprep.mubr.bf16.mxu0 %v1100_v11 }
  0xe6   : > { %v1000_v12 = vpop.f32.mrb[0].mxu0 }
  0xe7   : > { %v428_v13 = vpop.f32.mrb[1].mxu0 }
  0xe8   : > { %v1001_v14 = vpop.f32.mrb[2].mxu0 }
  0xe9   : > { %v492_v15 = vpack.c.bf16 %v1001_v14, %v1000_v12  ;;  %v431_v16 = vpop.f32.mrb[3].mxu0 }
  0xea   : > { %v491_v17 = vpack.c.bf16 %v431_v16, %v428_v13 }
  0xec   : > { %1014 = vmatprep.subr.bf16.mxu0 %v491_v17  ;;  %1046 = vmatprep.subr.bf16.mxu1 %v491_v17 }
  0xed   : > { %1015 = vmatpush3.bf16.msra.mxu0 %v491_v17  ;;  %1054 = vmatpush3.bf16.msra.mxu1 %v491_v17 }
  0xee   : > { %v1004_v18 = vpop.f32.mrb[4].mxu0  ;;  %1016 = vmatprep.subr.bf16.mxu0 %v492_v15  ;;  %1047 = vmatprep.subr.bf16.mxu1 %v492_v15 }
  0xef   : > { %v444_v19 = vpop.f32.mrb[5].mxu0 }
  0xf0   : > { %v1005_v20 = vpop.f32.mrb[6].mxu0 }
  0xf1   : > { %v494_v21 = vpack.c.bf16 %v1005_v20, %v1004_v18  ;;  %v447_v22 = vpop.f32.mrb[7].mxu0  ;;  %1017 = vmatpush3.bf16.msra.mxu0 %v492_v15  ;;  %1055 = vmatpush3.bf16.msra.mxu1 %v492_v15 }
  0xf2   : > { %v493_v23 = vpack.c.bf16 %v447_v22, %v444_v19 }
  0xf4   : > { %1018 = vmatprep.subr.bf16.mxu0 %v493_v23  ;;  %1048 = vmatprep.subr.bf16.mxu1 %v493_v23 }
  0xf5   : > { %1019 = vmatpush3.bf16.msra.mxu0 %v493_v23  ;;  %1056 = vmatpush3.bf16.msra.mxu1 %v493_v23 }
  0xf6   : > { %v1008_v24 = vpop.f32.mrb[8].mxu0  ;;  %1020 = vmatprep.subr.bf16.mxu0 %v494_v21  ;;  %1049 = vmatprep.subr.bf16.mxu1 %v494_v21 }
  0xf7   : > { %v460_v25 = vpop.f32.mrb[9].mxu0 }
  0xf8   : > { %v1009_v26 = vpop.f32.mrb[10].mxu0 }
  0xf9   : > { %v496_v27 = vpack.c.bf16 %v1009_v26, %v1008_v24  ;;  %v463_v28 = vpop.f32.mrb[11].mxu0  ;;  %1021 = vmatpush3.bf16.msra.mxu0 %v494_v21  ;;  %1057 = vmatpush3.bf16.msra.mxu1 %v494_v21 }
  0xfa   : > { %v495_v29 = vpack.c.bf16 %v463_v28, %v460_v25 }
  0xfc   : > { %1022 = vmatprep.subr.bf16.mxu0 %v495_v29  ;;  %1050 = vmatprep.subr.bf16.mxu1 %v495_v29 }
  0xfd   : > { %1023 = vmatpush3.bf16.msra.mxu0 %v495_v29  ;;  %1058 = vmatpush3.bf16.msra.mxu1 %v495_v29 }
  0xfe   : > { %v1012_v30 = vpop.f32.mrb[12].mxu0  ;;  %1024 = vmatprep.subr.bf16.mxu0 %v496_v27  ;;  %1051 = vmatprep.subr.bf16.mxu1 %v496_v27 }
  0xff   : > { %v476_v31 = vpop.f32.mrb[13].mxu0 }
 0x100   : > { %v1013_v32 = vpop.f32.mrb[14].mxu0 }
 0x101   : > { %v498_v33 = vpack.c.bf16 %v1013_v32, %v1012_v30  ;;  %v479_v34 = vpop.f32.mrb[15].mxu0  ;;  %1025 = vmatpush3.bf16.msra.mxu0 %v496_v27  ;;  %1059 = vmatpush3.bf16.msra.mxu1 %v496_v27 }
 0x102   : > { %v497_v35 = vpack.c.bf16 %v479_v34, %v476_v31 }
 0x104   : > { %1026 = vmatprep.subr.bf16.mxu0 %v497_v35  ;;  %1052 = vmatprep.subr.bf16.mxu1 %v497_v35 }
 0x105   : > { %1027 = vmatpush3.bf16.msra.mxu0 %v497_v35  ;;  %1060 = vmatpush3.bf16.msra.mxu1 %v497_v35 }
 0x106   : > { %1028 = vmatprep.subr.bf16.mxu0 %v498_v33  ;;  %1053 = vmatprep.subr.bf16.mxu1 %v498_v33 }
 0x109   : > { %1029 = vmatpush3.bf16.msra.mxu0 %v498_v33  ;;  %1061 = vmatpush3.bf16.msra.mxu1 %v498_v33 }
 0x10c   : > { %1035 = vmatmul.mubr.bf16.vlgmr.msra.gmra.mrb[0].mxu1 %v1097_v36  ;;  %1031 = vmatmul.mubr.bf16.vlgmr.msra.gmra.mrb[16].mxu0 %v1101_v37 }
 0x10d   : > { %1038 = vmatprep.mubr.bf16.mxu1 %v1098_v38 }
 0x114   : > { %1039 = vmatmul.mubr.bf16.gmra.mrb[4].mxu1 %v1099_v39 }
 0x115   : > { %1042 = vmatprep.mubr.bf16.mxu1 %v1102_v40 }
 0x11c   : > { %1043 = vmatmul.mubr.bf16.gmra.mrb[8].mxu1 %v1103_v41 }
 0x1df   : > { %v1036_v43 = vpop.f32.mrb[0].mxu1  ;;  %v1032_v44 = vpop.f32.mrb[16].mxu0 }
 0x1e0   : > { %v784_v45 = vadd.f32 %v1036_v43, %v962_v42  ;;  %v673_v46 = vpop.f32.mrb[1].mxu1  ;;  %v780_v47 = vadd.f32 %v1032_v44, %v962_v42  ;;  %v657_v48 = vpop.f32.mrb[17].mxu0 }
 0x1e1   : > { %v782_v49 = vadd.f32 %v962_v42, %v673_v46  ;;  %v1037_v50 = vpop.f32.mrb[2].mxu1  ;;  %v778_v51 = vadd.f32 %v962_v42, %v657_v48  ;;  %v1033_v52 = vpop.f32.mrb[18].mxu0 }
 0x1e2   : > { %800 = vst [vmem:[%s1211_s9 + $0x30] sm:$0xff] %v784_v45  ;;  %v785_v53 = vadd.f32 %v1037_v50, %v962_v42  ;;  %v676_v54 = vpop.f32.mrb[3].mxu1  ;;  %796 = vst [vmem:[%s1211_s9 + $0x10] sm:$0xff] %v780_v47  ;;  %v781_v55 = vadd.f32 %v1033_v52, %v962_v42  ;;  %v660_v56 = vpop.f32.mrb[19].mxu0 }
 0x1e3   : > { %798 = vst [vmem:[%s1211_s9 + $0x20] sm:$0xff] %v782_v49  ;;  %v783_v57 = vadd.f32 %v962_v42, %v676_v54  ;;  %794 = vst [vmem:[%s1211_s9] sm:$0xff] %v778_v51  ;;  %v779_v58 = vadd.f32 %v962_v42, %v660_v56 }
 0x1e4   : > { %801 = vst [vmem:[%s1211_s9 + $0x38] sm:$0xff] %v785_v53  ;;  %797 = vst [vmem:[%s1211_s9 + $0x18] sm:$0xff] %v781_v55 }
 0x1e5   : > { %799 = vst [vmem:[%s1211_s9 + $0x28] sm:$0xff] %v783_v57  ;;  %795 = vst [vmem:[%s1211_s9 + $0x8] sm:$0xff] %v779_v58 }
 0x1e7   : > { %v1040_v59 = vpop.f32.mrb[4].mxu1 }
 0x1e8   : > { %v788_v60 = vadd.f32 %v1040_v59, %v962_v42  ;;  %v689_v61 = vpop.f32.mrb[5].mxu1 }
 0x1e9   : > { %v786_v62 = vadd.f32 %v962_v42, %v689_v61  ;;  %v1041_v63 = vpop.f32.mrb[6].mxu1 }
 0x1ea   : > { %804 = vst [vmem:[%s1211_s9 + $0x50] sm:$0xff] %v788_v60  ;;  %v789_v0 = vadd.f32 %v1041_v63, %v962_v42  ;;  %v692_v1 = vpop.f32.mrb[7].mxu1 }
 0x1eb   : > { %802 = vst [vmem:[%s1211_s9 + $0x40] sm:$0xff] %v786_v62  ;;  %v787_v2 = vadd.f32 %v962_v42, %v692_v1 }
 0x1ec   : > { %805 = vst [vmem:[%s1211_s9 + $0x58] sm:$0xff] %v789_v0 }
 0x1ed   : > { %803 = vst [vmem:[%s1211_s9 + $0x48] sm:$0xff] %v787_v2 }
 0x1ef   : > { %v1044_v3 = vpop.f32.mrb[8].mxu1 }
 0x1f0   : > { %v792_v4 = vadd.f32 %v1044_v3, %v962_v42  ;;  %v705_v5 = vpop.f32.mrb[9].mxu1 }
 0x1f1   : > { %v790_v6 = vadd.f32 %v962_v42, %v705_v5  ;;  %v1045_v7 = vpop.f32.mrb[10].mxu1 }
 0x1f2   : > { %808 = vst [vmem:[%s1211_s9 + $0x70] sm:$0xff] %v792_v4  ;;  %v793_v8 = vadd.f32 %v1045_v7, %v962_v42  ;;  %v708_v9 = vpop.f32.mrb[11].mxu1 }
 0x1f3   : > { %806 = vst [vmem:[%s1211_s9 + $0x60] sm:$0xff] %v790_v6  ;;  %v791_v10 = vadd.f32 %v962_v42, %v708_v9 }
 0x1f4   : > { %809 = vst [vmem:[%s1211_s9 + $0x78] sm:$0xff] %v793_v8 }
 0x1f5   : > { %807 = vst [vmem:[%s1211_s9 + $0x68] sm:$0xff] %v791_v10 }
 0x1f6 PF: > { %s14_s17 = sadd.s32 1, %s1126_s17   ;;  %s1243_s15 = smov %s1122_s16 }
 0x1f7   : > { %p11_p5 = scmp.ge.s32.totalorder %s14_s17, 4   ;;  %s1244_s16 = smov %s1246_s18 }
 0x1f9   :  { %13 = sbr.rel (!%p11_p5) target bundleno = 2 (0x2), region = 83 }

</bundles_post_ra>
